<compile_context>
chip_gen: v6e
topology: v6e:2x2x1
jax: 0.10.0
libtpu: 0.0.40
codegen_flags: <defaults>
</compile_context>

<pallas_src>
import functools

import jax
import jax.numpy as jnp
from jax.experimental import pallas as pl
from jax.experimental.pallas import tpu as pltpu


def _round_up(x, m):
    return ((x + m - 1) // m) * m


def _cdiv(a, b):
    return (a + b - 1) // b


def _llama_mlp_kernel(x_ref, w0_ref, w1_ref, w2_ref, o_ref, acc_ref):
    # Grid: (token tiles i, output-column tiles j, intermediate chunks k).
    # k is the reduction axis (last, "arbitrary").
    k = pl.program_id(2)

    # Two MXU passes in native dtype, f32 accumulation on the MXU.
    h = jnp.dot(x_ref[...], w0_ref[...], preferred_element_type=jnp.float32)  # (tm, ti)
    g = jnp.dot(x_ref[...], w1_ref[...], preferred_element_type=jnp.float32)  # (tm, ti)

    # silu(h) * g in f32 (exact sigmoid; EUP has slack — kernel is MXU/HBM-bound).
    act = h * (1.0 / (1.0 + jnp.exp(-h)))
    gated = (act * g).astype(w2_ref.dtype)

    # Down-projection partial for this I-chunk.
    part = jnp.dot(gated, w2_ref[...], preferred_element_type=jnp.float32)  # (tm, tn)

    @pl.when(k == 0)
    def _first():
        acc_ref[...] = part

    @pl.when(k > 0)
    def _accum():
        acc_ref[...] += part

    @pl.when(k == pl.num_programs(2) - 1)
    def _finalize():
        o_ref[...] = acc_ref[...].astype(o_ref.dtype)


def _vmem_limit_bytes():
    # ~3/4 of physical VMEM: ~96 MiB on v5e/v6e (128 MiB), ~48 MiB on v7x (64 MiB).
    try:
        cap = int(pltpu.get_tpu_info().vmem_capacity_bytes)
    except Exception:
        cap = 64 << 20
    return min((cap * 3) // 4, 100 << 20)


def _pick_tiles(E_pad, x_bytes, w_bytes, o_bytes):
    """Pick (tm, ti) so double-buffered blocks + f32 accumulator fit in VMEM."""
    budget = _vmem_limit_bytes()
    for tm in (512, 384, 256, 128):
        for ti in (512, 256, 128):
            need = (
                2 * tm * E_pad * x_bytes          # x tile (double-buffered)
                + 2 * 2 * E_pad * ti * w_bytes    # w0_k + w1_k (double-buffered)
                + 2 * ti * E_pad * w_bytes        # w2_k (double-buffered, tn <= E_pad)
                + tm * E_pad * 4                  # f32 accumulator scratch
                + 2 * tm * E_pad * o_bytes        # out tile (double-buffered)
            )
            if need <= budget:
                return tm, ti
    return 128, 128


@functools.partial(jax.jit, static_argnames=("tm", "ti"))
def llama_mlp_forward(x, w0, w1, w2, *, tm=None, ti=None):
    """out = (silu(x @ w0) * (x @ w1)) @ w2, same shape/dtype as x.

    x: [..., E]; w0, w1: [E, I]; w2: [I, E].
    """
    orig_shape = x.shape
    E = orig_shape[-1]
    I = w0.shape[1]
    assert w0.shape == (E, I) and w1.shape == (E, I) and w2.shape == (I, E)

    xm = x.reshape(-1, E)
    M = xm.shape[0]

    E_pad = _round_up(E, 128)

    tm_max, ti_max = _pick_tiles(
        E_pad, x.dtype.itemsize, w0.dtype.itemsize, x.dtype.itemsize
    )
    if tm is not None:
        tm_max = tm
    if ti is not None:
        ti_max = ti

    # Balanced ragged-M tiling: at most one 8-row sublane group of padding.
    nm = max(1, _cdiv(M, tm_max))
    tm_sz = min(_round_up(_cdiv(M, nm), 8), _round_up(M, 8))
    M_pad = _round_up(M, tm_sz)
    nm = M_pad // tm_sz

    # Balanced I-chunking (lane-aligned).
    nk = max(1, _cdiv(I, ti_max))
    ti_sz = _round_up(_cdiv(I, nk), 128)
    I_pad = nk * ti_sz

    # Single-token-tile (decode-like) path: split output columns across a second
    # "parallel" axis so both v7x TensorCores do work.
    if nm == 1 and E_pad % 256 == 0:
        nj, tn = 2, E_pad // 2
    else:
        nj, tn = 1, E_pad

    # Pad only when the shapes actually need it (no-op copies otherwise).
    if M_pad != M or E_pad != E:
        xm = jnp.pad(xm, ((0, M_pad - M), (0, E_pad - E)))
    if E_pad != E or I_pad != I:
        w0 = jnp.pad(w0, ((0, E_pad - E), (0, I_pad - I)))
        w1 = jnp.pad(w1, ((0, E_pad - E), (0, I_pad - I)))
        w2 = jnp.pad(w2, ((0, I_pad - I), (0, E_pad - E)))

    grid = (nm, nj, nk)

    out = pl.pallas_call(
        _llama_mlp_kernel,
        out_shape=jax.ShapeDtypeStruct((M_pad, E_pad), x.dtype),
        grid_spec=pltpu.PrefetchScalarGridSpec(
            num_scalar_prefetch=0,
            grid=grid,
            in_specs=[
                pl.BlockSpec((tm_sz, E_pad), lambda i, j, k: (i, 0)),   # x tile (resident over j, k)
                pl.BlockSpec((E_pad, ti_sz), lambda i, j, k: (0, k)),   # w0_k streamed
                pl.BlockSpec((E_pad, ti_sz), lambda i, j, k: (0, k)),   # w1_k streamed
                pl.BlockSpec((ti_sz, tn), lambda i, j, k: (k, j)),      # w2_k column block streamed
            ],
            out_specs=pl.BlockSpec((tm_sz, tn), lambda i, j, k: (i, j)),
            scratch_shapes=[pltpu.VMEM((tm_sz, tn), jnp.float32)],
        ),
        compiler_params=pltpu.CompilerParams(
            dimension_semantics=("parallel", "parallel", "arbitrary"),
            vmem_limit_bytes=_vmem_limit_bytes(),
        ),
    )(xm, w0, w1, w2)

    return out[:M, :E].reshape(orig_shape)


def _reference(x, w0, w1, w2):
    xf = x.astype(jnp.float32)
    h = xf @ w0.astype(jnp.float32)
    g = xf @ w1.astype(jnp.float32)
    act = h * jax.nn.sigmoid(h)
    return ((act * g) @ w2.astype(jnp.float32)).astype(x.dtype)


if __name__ == "__main__":
    # Small shapes consistent with the module: embed_dim=32, intermediate_size=64.
    batch, seq, embed_dim, intermediate_size = 2, 8, 32, 64

    key = jax.random.PRNGKey(0)
    kx, k0, k1, k2 = jax.random.split(key, 4)

    x = jax.random.normal(kx, (batch, seq, embed_dim), dtype=jnp.float32)
    # Deterministic init mirroring nn.init.normal_(std=0.02)
    w0 = 0.02 * jax.random.normal(k0, (embed_dim, intermediate_size), dtype=jnp.float32)
    w1 = 0.02 * jax.random.normal(k1, (embed_dim, intermediate_size), dtype=jnp.float32)
    w2 = 0.02 * jax.random.normal(k2, (intermediate_size, embed_dim), dtype=jnp.float32)

    out = llama_mlp_forward(x, w0, w1, w2)
    out = jax.block_until_ready(out)

    ref = _reference(x, w0, w1, w2)
    assert out.shape == x.shape and out.dtype == x.dtype
    assert jnp.allclose(out, ref, atol=1e-4, rtol=1e-3), "mismatch vs reference"

    print("KERNEL_OK")
</pallas_src>

<mosaic_0001>
module attributes {stable_mosaic.version = 11 : i64} {
  func.func @_llama_mlp_kernel(%arg0: i32, %arg1: i32, %arg2: i32, %arg3: memref<16x128xf32, #tpu.memory_space<vmem>>, %arg4: memref<128x128xf32, #tpu.memory_space<vmem>>, %arg5: memref<128x128xf32, #tpu.memory_space<vmem>>, %arg6: memref<128x128xf32, #tpu.memory_space<vmem>>, %arg7: memref<16x128xf32, #tpu.memory_space<vmem>>, %arg8: memref<16x128xf32, #tpu.memory_space<vmem>>) attributes {dimension_semantics = [#tpu.dimension_semantics<parallel>, #tpu.dimension_semantics<parallel>, #tpu.dimension_semantics<arbitrary>], iteration_bounds = array<i64: 1, 1, 1>, scalar_prefetch = 0 : i64, scratch_operands = 1 : i64, tpu.core_type = #tpu.core_type<tc>, window_params = [{transform_indices = @transform_0, window_bounds = array<i64: 16, 128>}, {transform_indices = @transform_1, window_bounds = array<i64: 128, 128>}, {transform_indices = @transform_2, window_bounds = array<i64: 128, 128>}, {transform_indices = @transform_3, window_bounds = array<i64: 128, 128>}, {transform_indices = @transform_4, window_bounds = array<i64: 16, 128>}]} {
    %c0 = arith.constant 0 : index
    %c0_0 = arith.constant 0 : index
    %0 = vector.load %arg3[%c0, %c0_0] : memref<16x128xf32, #tpu.memory_space<vmem>>, vector<16x128xf32>
    %c0_1 = arith.constant 0 : index
    %c0_2 = arith.constant 0 : index
    %1 = vector.load %arg4[%c0_1, %c0_2] : memref<128x128xf32, #tpu.memory_space<vmem>>, vector<128x128xf32>
    %cst = arith.constant dense<0.000000e+00> : vector<16x128xf32>
    %2 = tpu.matmul %0, %1, %cst {dimension_numbers = #tpu.dot_dimension_numbers<[1], [0], [0], [1], [0, 0, 1, 1], [], []>} : vector<16x128xf32>, vector<128x128xf32>, vector<16x128xf32> -> vector<16x128xf32>
    %c0_3 = arith.constant 0 : index
    %c0_4 = arith.constant 0 : index
    %3 = vector.load %arg3[%c0_3, %c0_4] : memref<16x128xf32, #tpu.memory_space<vmem>>, vector<16x128xf32>
    %c0_5 = arith.constant 0 : index
    %c0_6 = arith.constant 0 : index
    %4 = vector.load %arg5[%c0_5, %c0_6] : memref<128x128xf32, #tpu.memory_space<vmem>>, vector<128x128xf32>
    %cst_7 = arith.constant dense<0.000000e+00> : vector<16x128xf32>
    %5 = tpu.matmul %3, %4, %cst_7 {dimension_numbers = #tpu.dot_dimension_numbers<[1], [0], [0], [1], [0, 0, 1, 1], [], []>} : vector<16x128xf32>, vector<128x128xf32>, vector<16x128xf32> -> vector<16x128xf32>
    %cst_8 = arith.constant 0.000000e+00 : f32
    %6 = vector.broadcast %cst_8 : f32 to vector<16x128xf32>
    %7 = arith.subf %6, %2 : vector<16x128xf32>
    %8 = math.exp %7 : vector<16x128xf32>
    %cst_9 = arith.constant 1.000000e+00 : f32
    %9 = vector.broadcast %cst_9 : f32 to vector<16x128xf32>
    %10 = arith.addf %9, %8 : vector<16x128xf32>
    %cst_10 = arith.constant 1.000000e+00 : f32
    %11 = vector.broadcast %cst_10 : f32 to vector<16x128xf32>
    %12 = arith.divf %11, %10 : vector<16x128xf32>
    %13 = arith.mulf %2, %12 : vector<16x128xf32>
    %14 = arith.mulf %13, %5 : vector<16x128xf32>
    %c0_11 = arith.constant 0 : index
    %c0_12 = arith.constant 0 : index
    %15 = vector.load %arg6[%c0_11, %c0_12] : memref<128x128xf32, #tpu.memory_space<vmem>>, vector<128x128xf32>
    %cst_13 = arith.constant dense<0.000000e+00> : vector<16x128xf32>
    %16 = tpu.matmul %14, %15, %cst_13 {dimension_numbers = #tpu.dot_dimension_numbers<[1], [0], [0], [1], [0, 0, 1, 1], [], []>} : vector<16x128xf32>, vector<128x128xf32>, vector<16x128xf32> -> vector<16x128xf32>
    %c0_i32 = arith.constant 0 : i32
    %17 = arith.cmpi eq, %arg2, %c0_i32 : i32
    %18 = arith.extui %17 : i1 to i32
    %c0_i32_14 = arith.constant 0 : i32
    %19 = arith.cmpi ne, %18, %c0_i32_14 : i32
    scf.if %19 {
      %c0_19 = arith.constant 0 : index
      %c0_20 = arith.constant 0 : index
      %26 = vector.load %arg8[%c0_19, %c0_20] : memref<16x128xf32, #tpu.memory_space<vmem>>, vector<16x128xf32>
      tpu.vector_store %arg8[%c0_19, %c0_20], %16 {strides = array<i32>} : memref<16x128xf32, #tpu.memory_space<vmem>>, vector<16x128xf32>,
    } else {
    }
    %c0_i32_15 = arith.constant 0 : i32
    %20 = arith.cmpi sgt, %arg2, %c0_i32_15 : i32
    %21 = arith.extui %20 : i1 to i32
    %c0_i32_16 = arith.constant 0 : i32
    %22 = arith.cmpi ne, %21, %c0_i32_16 : i32
    scf.if %22 {
      %c0_19 = arith.constant 0 : index
      %c0_20 = arith.constant 0 : index
      %26 = vector.load %arg8[%c0_19, %c0_20] : memref<16x128xf32, #tpu.memory_space<vmem>>, vector<16x128xf32>
      %27 = arith.addf %26, %16 : vector<16x128xf32>
      %c0_21 = arith.constant 0 : index
      %c0_22 = arith.constant 0 : index
      %28 = vector.load %arg8[%c0_21, %c0_22] : memref<16x128xf32, #tpu.memory_space<vmem>>, vector<16x128xf32>
      tpu.vector_store %arg8[%c0_21, %c0_22], %27 {strides = array<i32>} : memref<16x128xf32, #tpu.memory_space<vmem>>, vector<16x128xf32>,
    } else {
    }
    %c0_i32_17 = arith.constant 0 : i32
    %23 = arith.cmpi eq, %arg2, %c0_i32_17 : i32
    %24 = arith.extui %23 : i1 to i32
    %c0_i32_18 = arith.constant 0 : i32
    %25 = arith.cmpi ne, %24, %c0_i32_18 : i32
    scf.if %25 {
      %c0_19 = arith.constant 0 : index
      %c0_20 = arith.constant 0 : index
      %26 = vector.load %arg8[%c0_19, %c0_20] : memref<16x128xf32, #tpu.memory_space<vmem>>, vector<16x128xf32>
      %c0_21 = arith.constant 0 : index
      %c0_22 = arith.constant 0 : index
      %27 = vector.load %arg7[%c0_21, %c0_22] : memref<16x128xf32, #tpu.memory_space<vmem>>, vector<16x128xf32>
      tpu.vector_store %arg7[%c0_21, %c0_22], %26 {strides = array<i32>} : memref<16x128xf32, #tpu.memory_space<vmem>>, vector<16x128xf32>,
    } else {
    }
    return
  }
  func.func @transform_0(%arg0: i32, %arg1: i32, %arg2: i32) -> (i32, i32) {
    %c0_i32 = arith.constant 0 : i32
    %c0_i32_0 = arith.constant 0 : i32
    return %arg0, %c0_i32 : i32, i32
  }
  func.func @transform_1(%arg0: i32, %arg1: i32, %arg2: i32) -> (i32, i32) {
    %c0_i32 = arith.constant 0 : i32
    %c0_i32_0 = arith.constant 0 : i32
    return %c0_i32, %arg2 : i32, i32
  }
  func.func @transform_2(%arg0: i32, %arg1: i32, %arg2: i32) -> (i32, i32) {
    %c0_i32 = arith.constant 0 : i32
    %c0_i32_0 = arith.constant 0 : i32
    return %c0_i32, %arg2 : i32, i32
  }
  func.func @transform_3(%arg0: i32, %arg1: i32, %arg2: i32) -> (i32, i32) {
    %c0_i32 = arith.constant 0 : i32
    return %arg2, %arg1 : i32, i32
  }
  func.func @transform_4(%arg0: i32, %arg1: i32, %arg2: i32) -> (i32, i32) {
    %c0_i32 = arith.constant 0 : i32
    return %arg0, %arg1 : i32, i32
  }
}

</mosaic_0001>

<bundles_post_ra>
// kernel: llama_mlp_forward.1
= control target key start
LH: loop header
LB: loop body
LE: loop exit
PB: predicated region body
PF: predicated region fallthrough
CT: control target
= control target key end

     0   :  { %s687_s1 = inlined_call_operand.vmem [shape: f32[128,128], index: 1, kind: input, shape index: {}]   ;;  %s688_s0 = inlined_call_operand.vmem [shape: f32[16,128], index: 0, kind: input, shape index: {}]   ;;  %s689_s2 = inlined_call_operand.vmem [shape: f32[128,128], index: 2, kind: input, shape index: {}]   ;;  %s690_s3 = inlined_call_operand.vmem [shape: f32[128,128], index: 3, kind: input, shape index: {}]   ;;  %s691_s4 = inlined_call_operand.vmem [shape: f32[16,128], index: 4, kind: output, shape index: {}]  }
   0x1   :  { %v34_v0 = vld [vmem:[%s687_s1 + $0x78] sm:$0xff]  ;;  %v33_v1 = vld [vmem:[%s687_s1 + $0x70] sm:$0xff]  ;;  %v32_v2 = vld [vmem:[%s687_s1 + $0x68] sm:$0xff] }
   0x2   :  { %389 = vmatprep.subr.mxu0 %v34_v0  ;;  %v31_v3 = vld [vmem:[%s687_s1 + $0x60] sm:$0xff]  ;;  %v30_v5 = vld [vmem:[%s687_s1 + $0x58] sm:$0xff]  ;;  %v124_v7 = vld [vmem:[%s689_s2 + $0x70] sm:$0xff] }
   0x3   :  { %390 = vmatpush3.msra.mxu0 %v34_v0  ;;  %v542_v4 = vld [vmem:[%s688_s0] sm:$0xff]  ;;  %v125_v6 = vld [vmem:[%s689_s2 + $0x78] sm:$0xff]  ;;  %v29_v8 = vld [vmem:[%s687_s1 + $0x50] sm:$0xff] }
   0x4   :  { %391 = vmatprep.subr.mxu0 %v33_v1  ;;  %421 = vmatprep.mubr.f32.mxu0 %v542_v4  ;;  %v123_v9 = vld [vmem:[%s689_s2 + $0x68] sm:$0xff]  ;;  %v122_v11 = vld [vmem:[%s689_s2 + $0x60] sm:$0xff]  ;;  %v121_v13 = vld [vmem:[%s689_s2 + $0x58] sm:$0xff] }
   0x5   :  { %392 = vmatpush3.msra.mxu0 %v33_v1  ;;  %424 = vmatprep.subr.mxu1 %v125_v6  ;;  %v28_v10 = vld [vmem:[%s687_s1 + $0x48] sm:$0xff]  ;;  %v27_v12 = vld [vmem:[%s687_s1 + $0x40] sm:$0xff]  ;;  %v26_v14 = vld [vmem:[%s687_s1 + $0x38] sm:$0xff] }
   0x6   :  { %393 = vmatprep.subr.mxu0 %v32_v2  ;;  %425 = vmatpush3.msra.mxu1 %v125_v6  ;;  %v120_v15 = vld [vmem:[%s689_s2 + $0x50] sm:$0xff]  ;;  %v119_v17 = vld [vmem:[%s689_s2 + $0x48] sm:$0xff]  ;;  %v118_v19 = vld [vmem:[%s689_s2 + $0x40] sm:$0xff] }
   0x7   :  { %394 = vmatpush3.msra.mxu0 %v32_v2  ;;  %426 = vmatprep.subr.mxu1 %v124_v7  ;;  %v25_v16 = vld [vmem:[%s687_s1 + $0x30] sm:$0xff]  ;;  %v24_v18 = vld [vmem:[%s687_s1 + $0x28] sm:$0xff]  ;;  %v23_v20 = vld [vmem:[%s687_s1 + $0x20] sm:$0xff] }
   0x8   :  { %395 = vmatprep.subr.mxu0 %v31_v3  ;;  %427 = vmatpush3.msra.mxu1 %v124_v7  ;;  %v117_v21 = vld [vmem:[%s689_s2 + $0x38] sm:$0xff]  ;;  %v116_v23 = vld [vmem:[%s689_s2 + $0x30] sm:$0xff]  ;;  %v115_v25 = vld [vmem:[%s689_s2 + $0x28] sm:$0xff] }
   0x9   :  { %396 = vmatpush3.msra.mxu0 %v31_v3  ;;  %428 = vmatprep.subr.mxu1 %v123_v9  ;;  %v22_v22 = vld [vmem:[%s687_s1 + $0x18] sm:$0xff]  ;;  %v21_v24 = vld [vmem:[%s687_s1 + $0x10] sm:$0xff]  ;;  %v20_v26 = vld [vmem:[%s687_s1 + $0x8] sm:$0xff] }
   0xa   :  { %397 = vmatprep.subr.mxu0 %v30_v5  ;;  %429 = vmatpush3.msra.mxu1 %v123_v9  ;;  %v114_v27 = vld [vmem:[%s689_s2 + $0x20] sm:$0xff]  ;;  %v113_v29 = vld [vmem:[%s689_s2 + $0x18] sm:$0xff]  ;;  %v18_v30 = vld [vmem:[%s688_s0 + $0x8] sm:$0xff] }
   0xb   :  { %398 = vmatpush3.msra.mxu0 %v30_v5  ;;  %430 = vmatprep.subr.mxu1 %v122_v11  ;;  %v19_v28 = vld [vmem:[%s687_s1] sm:$0xff]  ;;  %v112_v31 = vld [vmem:[%s689_s2 + $0x10] sm:$0xff]  ;;  %v111_v32 = vld [vmem:[%s689_s2 + $0x8] sm:$0xff] }
   0xc   :  { %399 = vmatprep.subr.mxu0 %v29_v8  ;;  %431 = vmatpush3.msra.mxu1 %v122_v11  ;;  %v110_v33 = vld [vmem:[%s689_s2] sm:$0xff]  ;;  %v232_v34 = vld [vmem:[%s690_s3 + $0x78] sm:$0xff]  ;;  %v231_v35 = vld [vmem:[%s690_s3 + $0x70] sm:$0xff] }
   0xd   :  { %400 = vmatpush3.msra.mxu0 %v29_v8  ;;  %432 = vmatprep.subr.mxu1 %v121_v13  ;;  %v230_v36 = vld [vmem:[%s690_s3 + $0x68] sm:$0xff]  ;;  %v229_v37 = vld [vmem:[%s690_s3 + $0x60] sm:$0xff]  ;;  %v228_v38 = vld [vmem:[%s690_s3 + $0x58] sm:$0xff] }
   0xe   :  { %401 = vmatprep.subr.mxu0 %v28_v10  ;;  %433 = vmatpush3.msra.mxu1 %v121_v13  ;;  %v227_v39 = vld [vmem:[%s690_s3 + $0x50] sm:$0xff]  ;;  %v226_v40 = vld [vmem:[%s690_s3 + $0x48] sm:$0xff]  ;;  %v225_v41 = vld [vmem:[%s690_s3 + $0x40] sm:$0xff] }
   0xf   :  { %402 = vmatpush3.msra.mxu0 %v28_v10  ;;  %434 = vmatprep.subr.mxu1 %v120_v15  ;;  %v224_v42 = vld [vmem:[%s690_s3 + $0x38] sm:$0xff]  ;;  %v223_v43 = vld [vmem:[%s690_s3 + $0x30] sm:$0xff]  ;;  %v222_v44 = vld [vmem:[%s690_s3 + $0x28] sm:$0xff] }
  0x10   :  { %403 = vmatprep.subr.mxu0 %v27_v12  ;;  %435 = vmatpush3.msra.mxu1 %v120_v15  ;;  %v221_v45 = vld [vmem:[%s690_s3 + $0x20] sm:$0xff]  ;;  %v220_v46 = vld [vmem:[%s690_s3 + $0x18] sm:$0xff]  ;;  %v219_v47 = vld [vmem:[%s690_s3 + $0x10] sm:$0xff] }
  0x11   :  { %404 = vmatpush3.msra.mxu0 %v27_v12  ;;  %436 = vmatprep.subr.mxu1 %v119_v17  ;;  %v218_v48 = vld [vmem:[%s690_s3 + $0x8] sm:$0xff]  ;;  %v217_v49 = vld [vmem:[%s690_s3] sm:$0xff] }
  0x12   :  { %405 = vmatprep.subr.mxu0 %v26_v14  ;;  %437 = vmatpush3.msra.mxu1 %v119_v17 }
  0x13   :  { %406 = vmatpush3.msra.mxu0 %v26_v14  ;;  %438 = vmatprep.subr.mxu1 %v118_v19 }
  0x14   :  { %407 = vmatprep.subr.mxu0 %v25_v16  ;;  %439 = vmatpush3.msra.mxu1 %v118_v19 }
  0x15   :  { %408 = vmatpush3.msra.mxu0 %v25_v16  ;;  %440 = vmatprep.subr.mxu1 %v117_v21 }
  0x16   :  { %409 = vmatprep.subr.mxu0 %v24_v18  ;;  %441 = vmatpush3.msra.mxu1 %v117_v21 }
  0x17   :  { %410 = vmatpush3.msra.mxu0 %v24_v18  ;;  %442 = vmatprep.subr.mxu1 %v116_v23 }
  0x18   :  { %411 = vmatprep.subr.mxu0 %v23_v20  ;;  %443 = vmatpush3.msra.mxu1 %v116_v23 }
  0x19   :  { %412 = vmatpush3.msra.mxu0 %v23_v20  ;;  %444 = vmatprep.subr.mxu1 %v115_v25 }
  0x1a   :  { %413 = vmatprep.subr.mxu0 %v22_v22  ;;  %445 = vmatpush3.msra.mxu1 %v115_v25 }
  0x1b   :  { %414 = vmatpush3.msra.mxu0 %v22_v22  ;;  %446 = vmatprep.subr.mxu1 %v114_v27 }
  0x1c   :  { %415 = vmatprep.subr.mxu0 %v21_v24  ;;  %447 = vmatpush3.msra.mxu1 %v114_v27 }
  0x1d   :  { %416 = vmatpush3.msra.mxu0 %v21_v24  ;;  %448 = vmatprep.subr.mxu1 %v113_v29 }
  0x1e   :  { %417 = vmatprep.subr.mxu0 %v20_v26  ;;  %449 = vmatpush3.msra.mxu1 %v113_v29 }
  0x1f   :  { %418 = vmatpush3.msra.mxu0 %v20_v26  ;;  %450 = vmatprep.subr.mxu1 %v112_v31 }
  0x20   :  { %419 = vmatprep.subr.mxu0 %v19_v28  ;;  %451 = vmatpush3.msra.mxu1 %v112_v31 }
  0x21   :  { %420 = vmatpush3.msra.mxu0 %v19_v28  ;;  %456 = vmatprep.mubr.f32.mxu1 %v542_v4 }
  0x22   :  { %422 = vmatmul.mubr.f32.vlgmr.msra.gmra.mxu0 %v18_v30  ;;  %452 = vmatprep.subr.mxu1 %v111_v32 }
  0x23   :  { %453 = vmatpush3.msra.mxu1 %v111_v32  ;;  %459 = vmatprep.subr.mxu0 %v232_v34 }
  0x24   :  { %454 = vmatprep.subr.mxu1 %v110_v33  ;;  %460 = vmatpush3.msra.mxu0 %v232_v34 }
  0x25   :  { %455 = vmatpush3.msra.mxu1 %v110_v33  ;;  %461 = vmatprep.subr.mxu0 %v231_v35 }
  0x26   :  { %457 = vmatmul.mubr.f32.vlgmr.msra.gmra.mxu1 %v18_v30  ;;  %462 = vmatpush3.msra.mxu0 %v231_v35 }
  0x27   :  { %463 = vmatprep.subr.mxu0 %v230_v36 }
  0x28   :  { %464 = vmatpush3.msra.mxu0 %v230_v36 }
  0x29   :  { %465 = vmatprep.subr.mxu0 %v229_v37 }
  0x2a   :  { %466 = vmatpush3.msra.mxu0 %v229_v37 }
  0x2b   :  { %467 = vmatprep.subr.mxu0 %v228_v38 }
  0x2c   :  { %468 = vmatpush3.msra.mxu0 %v228_v38 }
  0x2d   :  { %469 = vmatprep.subr.mxu0 %v227_v39 }
  0x2e   :  { %470 = vmatpush3.msra.mxu0 %v227_v39 }
  0x2f   :  { %471 = vmatprep.subr.mxu0 %v226_v40 }
  0x30   :  { %472 = vmatpush3.msra.mxu0 %v226_v40 }
  0x31   :  { %473 = vmatprep.subr.mxu0 %v225_v41 }
  0x32   :  { %474 = vmatpush3.msra.mxu0 %v225_v41 }
  0x33   :  { %475 = vmatprep.subr.mxu0 %v224_v42 }
  0x34   :  { %476 = vmatpush3.msra.mxu0 %v224_v42 }
  0x35   :  { %477 = vmatprep.subr.mxu0 %v223_v43 }
  0x36   :  { %478 = vmatpush3.msra.mxu0 %v223_v43 }
  0x37   :  { %479 = vmatprep.subr.mxu0 %v222_v44 }
  0x38   :  { %480 = vmatpush3.msra.mxu0 %v222_v44 }
  0x39   :  { %481 = vmatprep.subr.mxu0 %v221_v45 }
  0x3a   :  { %482 = vmatpush3.msra.mxu0 %v221_v45 }
  0x3b   :  { %483 = vmatprep.subr.mxu0 %v220_v46 }
  0x3c   :  { %484 = vmatpush3.msra.mxu0 %v220_v46 }
  0x3d   :  { %485 = vmatprep.subr.mxu0 %v219_v47 }
  0x3e   :  { %486 = vmatpush3.msra.mxu0 %v219_v47 }
  0x3f   :  { %487 = vmatprep.subr.mxu0 %v218_v48 }
  0x40   :  { %488 = vmatpush3.msra.mxu0 %v218_v48 }
  0x41   :  { %489 = vmatprep.subr.mxu0 %v217_v49 }
  0x42   :  { %490 = vmatpush3.msra.mxu0 %v217_v49 }
  0xe2   :  { %v423_v50 = vpop.f32.mrf.mxu0 }
  0xe3   :  { %v202_v51 = vsub.f32 0.0, %v423_v50 }
  0xe4   :  { %v101_v52 = vpop.f32.mrf.mxu0 }
  0xe5   :  { %v205_v53 = vmul.f32 1.442695, %v202_v51  ;;  %v201_v54 = vsub.f32 0.0, %v101_v52 }
  0xe6   :  { %v458_v61 = vpop.f32.mrf.mxu1 }
  0xe7   :  { %494 = vpow2.f32 %v205_v53  ;;  %v203_v55 = vmul.f32 1.442695, %v201_v54 }
  0xe8   :  { %v192_v1 = vpop.f32.mrf.mxu1 }
  0xe9   :  { %496 = vpow2.f32 %v203_v55 }
  0xf4   :  { %v495_v56 = vpop.eup %494 }
  0xf5   :  { %v208_v57 = vadd.f32 1.0, %v495_v56 }
  0xf6   :  { %v497_v58 = vpop.eup %496 }
  0xf7   :  { %498 = vrcp.f32 %v208_v57  ;;  %v207_v59 = vadd.f32 1.0, %v497_v58 }
  0xf9   :  { %500 = vrcp.f32 %v207_v59 }
 0x104   :  { %v499_v60 = vpop.eup %498 }
 0x105   :  { %v214_v63 = vmul.f32 %v499_v60, %v423_v50 }
 0x106   :  { %v501_v62 = vpop.eup %500 }
 0x107   :  { %v213_v0 = vmul.f32 %v501_v62, %v101_v52  ;;  %v216_v3 = vmul.f32 %v458_v61, %v214_v63 }
 0x109   :  { %v215_v2 = vmul.f32 %v213_v0, %v192_v1 }
 0x10b   :  { %491 = vmatprep.mubr.f32.mxu0 %v215_v2 }
 0x10c   :  { %492 = vmatmul.mubr.f32.vlgmr.msra.gmra.mxu0 %v216_v3 }
 0x1cc   :  { %v493_v4 = vpop.f32.mrf.mxu0 }
 0x1cd   :  { %330 = vst [vmem:[%s691_s4 + $0x8] sm:$0xff] %v493_v4 }
 0x1ce   :  { %v299_v5 = vpop.f32.mrf.mxu0 }
 0x1cf   :  { %329 = vst [vmem:[%s691_s4] sm:$0xff] %v299_v5 }

</bundles_post_ra>
